<compile_context>
chip_gen: v7x
topology: tpu7x:2x2x1
jax: 0.10.0
libtpu: 0.0.40
codegen_flags: <defaults>
</compile_context>

<pallas_src>
import jax
import jax.numpy as jnp
from jax.experimental import pallas as pl
from jax.experimental.pallas import tpu as pltpu


def _round_up(x: int, m: int) -> int:
    return ((x + m - 1) // m) * m


def _round_down(x: int, m: int) -> int:
    return (x // m) * m


def _default_vmem_limit_bytes() -> int:
    """Pick a per-generation VMEM limit (leave headroom for compiler scratch)."""
    cap = None
    try:
        info = pltpu.get_tpu_info()
        cap = getattr(info, "vmem_capacity_bytes", None)
    except Exception:
        cap = None
    if cap is None:
        cap = 64 * 1024 * 1024  # conservative fallback
    if cap <= 64 * 1024 * 1024:
        # v7x-class: 64 MiB physical per TensorCore -> cap at 48 MiB.
        return 48 * 1024 * 1024
    # v5e/v6e-class: 128 MiB physical -> 96 MiB is comfortably safe.
    return 96 * 1024 * 1024


def _make_ffm_kernel(num_fields: int, factor_dim: int):
    """Build the FFM kernel body with static F / K baked in."""

    def kernel(sparse_ref, dense_ref, w_ref, b_ref, out_ref):
        # sparse_ref: (TB, D)    VMEM  (one batch tile)
        # dense_ref : (TB, F*K)  VMEM  (flattened dense features, lane-dense)
        # w_ref     : (1, D)     VMEM  (nn.Linear weight, resident across grid)
        # b_ref     : (1,)       SMEM  (bias scalar)
        # out_ref   : (TB, 1)    VMEM
        f32 = jnp.float32

        # ---- linear term: VPU multiply + lane reduction (no MXU) ----------
        x = sparse_ref[...].astype(f32)                    # (TB, D)
        w = w_ref[...].astype(f32)                         # (1, D), broadcast
        y_linear = jnp.sum(x * w, axis=1, keepdims=True) + b_ref[0]   # (TB, 1)

        # ---- pairwise FM term on the flattened dense layout ---------------
        d = dense_ref[...].astype(f32)                     # (TB, F*K)

        # sum_k sum_f d^2 == sum over the flattened last axis of d^2
        sum_of_square = jnp.sum(d * d, axis=1, keepdims=True)          # (TB, 1)

        # S_k = sum_f d[:, f, k] recovered via F static lane slices
        k = factor_dim
        s = d[:, 0:k]                                      # (TB, K)
        for f in range(1, num_fields):
            s = s + d[:, f * k:(f + 1) * k]
        square_of_sum = jnp.sum(s * s, axis=1, keepdims=True)          # (TB, 1)

        # 0.5 applied to the per-row scalar, not the (TB, K) block
        y_pairwise = 0.5 * (square_of_sum - sum_of_square)             # (TB, 1)

        out_ref[...] = y_linear + y_pairwise

    return kernel


def ffm_layer(sparse_x, dense_x, weight, bias, *,
              block_rows: int = 4096,
              vmem_limit_bytes: int | None = None):
    """Pallas FFMLayer forward.

    sparse_x: (B, D) float32 or bfloat16
    dense_x : (B, F, K) float32 or bfloat16
    weight  : (1, D) (same layout as torch nn.Linear(input_dim, 1).weight)
    bias    : (1,)
    returns : (B,) float32
    """
    B, D = sparse_x.shape
    _, F, K = dense_x.shape
    FK = F * K

    if vmem_limit_bytes is None:
        vmem_limit_bytes = _default_vmem_limit_bytes()

    # Free, contiguous reshape -> lane-dense dense tiles.
    dense_flat = dense_x.reshape(B, FK)
    w = weight.reshape(1, D)
    b = bias.reshape(1).astype(jnp.float32)

    # ---- tile sizing: largest batch tile that fits the VMEM budget ---------
    lane = 128
    sp_item = sparse_x.dtype.itemsize
    dn_item = dense_x.dtype.itemsize

    # Sublane multiple: 8 for 4-byte, 16 for 2-byte, 32 for 1-byte dtypes.
    sub_mult = max(32 // sp_item, 32 // dn_item, 8)

    # Double-buffered per-row VMEM footprint (lane-padded tiles + output).
    per_row_bytes = (_round_up(D, lane) * sp_item
                     + _round_up(FK, lane) * dn_item
                     + lane * 4)                       # (TB, 1) output lane pad
    budget = int(0.85 * vmem_limit_bytes)
    tb_budget = budget // (2 * per_row_bytes)          # x2 for double buffering

    tb = min(tb_budget, block_rows, _round_up(B, sub_mult))
    tb = max(sub_mult, _round_down(tb, sub_mult))

    num_tiles = pl.cdiv(B, tb)   # ragged last block handled by Pallas masking

    kernel = _make_ffm_kernel(F, K)

    # Advisory cost: true HBM traffic + flop count (helps XLA overlap).
    bytes_accessed = B * (D * sp_item + FK * dn_item) + B * 4 + D * 4
    flops = B * (2 * D + 3 * FK + 2 * K + 4)
    cost = pl.CostEstimate(flops=flops, transcendentals=0,
                           bytes_accessed=bytes_accessed)

    out = pl.pallas_call(
        kernel,
        out_shape=jax.ShapeDtypeStruct((B, 1), jnp.float32),
        grid=(num_tiles,),
        in_specs=[
            pl.BlockSpec((tb, D), lambda i: (i, 0)),      # sparse batch tile
            pl.BlockSpec((tb, FK), lambda i: (i, 0)),     # flattened dense tile
            pl.BlockSpec((1, D), lambda i: (0, 0)),       # weight, resident block
            pl.BlockSpec(memory_space=pltpu.MemorySpace.SMEM),  # bias scalar
        ],
        out_specs=pl.BlockSpec((tb, 1), lambda i: (i, 0)),
        compiler_params=pltpu.CompilerParams(
            dimension_semantics=("parallel",),            # megacore sharding
            vmem_limit_bytes=vmem_limit_bytes,
        ),
        cost_estimate=cost,
    )(sparse_x, dense_flat, w, b)

    return out[:, 0]                                      # (B,)


def ffm_layer_ref(sparse_x, dense_x, weight, bias):
    """Pure-JAX reference mirroring the PyTorch forward exactly."""
    y_linear = sparse_x @ weight.T + bias                       # (B, 1)
    square_of_sum = jnp.square(jnp.sum(dense_x, axis=1))        # (B, K)
    sum_of_square = jnp.sum(jnp.square(dense_x), axis=1)        # (B, K)
    y_pairwise = 0.5 * jnp.sum(square_of_sum - sum_of_square, axis=1)
    return y_linear[:, 0] + y_pairwise                          # (B,)


if __name__ == "__main__":
    # Small shapes consistent with the module's forward contract.
    batch_size = 2
    num_fields = 8
    factor_dim = 4
    input_dim = 64   # total sparse feature dimension

    key = jax.random.PRNGKey(0)
    k_sparse, k_dense, k_w = jax.random.split(key, 3)

    sparse_x = jax.random.normal(k_sparse, (batch_size, input_dim), dtype=jnp.float32)
    dense_x = jax.random.normal(
        k_dense, (batch_size, num_fields, factor_dim), dtype=jnp.float32)

    # Deterministic parameter init matching _initialize_weights():
    #   weight ~ N(0, 0.01), bias = 0
    weight = 0.01 * jax.random.normal(k_w, (1, input_dim), dtype=jnp.float32)
    bias = jnp.zeros((1,), dtype=jnp.float32)

    y = ffm_layer(sparse_x, dense_x, weight, bias)
    y = jax.block_until_ready(y)

    y_ref = ffm_layer_ref(sparse_x, dense_x, weight, bias)
    assert y.shape == (batch_size,)
    assert jnp.allclose(y, y_ref, atol=1e-4, rtol=1e-4), (y, y_ref)

    print("KERNEL_OK")
</pallas_src>

<mosaic_0001>
module attributes {stable_mosaic.version = 11 : i64} {
  func.func @kernel(%arg0: i32, %arg1: memref<8x64xf32, #tpu.memory_space<vmem>>, %arg2: memref<8x32xf32, #tpu.memory_space<vmem>>, %arg3: memref<1x64xf32, #tpu.memory_space<vmem>>, %arg4: memref<1xf32, #tpu.memory_space<smem>>, %arg5: memref<8x1xf32, #tpu.memory_space<vmem>>) attributes {dimension_semantics = [#tpu.dimension_semantics<parallel>], iteration_bounds = array<i64: 1>, scalar_prefetch = 0 : i64, scratch_operands = 0 : i64, tpu.core_type = #tpu.core_type<tc>, window_params = [{transform_indices = @transform_0, window_bounds = array<i64: 8, 64>}, {transform_indices = @transform_1, window_bounds = array<i64: 8, 32>}, {pipeline_mode = #tpu.pipeline_mode<synchronous>, transform_indices = @transform_2, window_bounds = array<i64: 1, 64>}, {transform_indices = @transform_3, window_bounds = array<i64: 1>}, {transform_indices = @transform_4, window_bounds = array<i64: 8, 1>}]} {
    %c0 = arith.constant 0 : index
    %c0_0 = arith.constant 0 : index
    %0 = vector.load %arg1[%c0, %c0_0] : memref<8x64xf32, #tpu.memory_space<vmem>>, vector<8x64xf32>
    %c0_1 = arith.constant 0 : index
    %c0_2 = arith.constant 0 : index
    %1 = vector.load %arg3[%c0_1, %c0_2] : memref<1x64xf32, #tpu.memory_space<vmem>>, vector<1x64xf32>
    %2 = vector.broadcast %1 : vector<1x64xf32> to vector<8x64xf32>
    %3 = arith.mulf %0, %2 : vector<8x64xf32>
    %cst = arith.constant dense<0.000000e+00> : vector<8xf32>
    %4 = vector.multi_reduction <add>, %3, %cst [1] : vector<8x64xf32> to vector<8xf32>
    %5 = vector.shape_cast %4 : vector<8xf32> to vector<8x1xf32>
    %c0_3 = arith.constant 0 : index
    %6 = memref.load %arg4[%c0_3] : memref<1xf32, #tpu.memory_space<smem>>
    %7 = vector.broadcast %6 : f32 to vector<8x1xf32>
    %8 = arith.addf %5, %7 : vector<8x1xf32>
    %c0_4 = arith.constant 0 : index
    %c0_5 = arith.constant 0 : index
    %9 = vector.load %arg2[%c0_4, %c0_5] : memref<8x32xf32, #tpu.memory_space<vmem>>, vector<8x32xf32>
    %10 = arith.mulf %9, %9 : vector<8x32xf32>
    %cst_6 = arith.constant dense<0.000000e+00> : vector<8xf32>
    %11 = vector.multi_reduction <add>, %10, %cst_6 [1] : vector<8x32xf32> to vector<8xf32>
    %12 = vector.shape_cast %11 : vector<8xf32> to vector<8x1xf32>
    %13 = vector.extract_strided_slice %9 {offsets = [0, 0], sizes = [8, 4], strides = [1, 1]} : vector<8x32xf32> to vector<8x4xf32>
    %14 = vector.extract_strided_slice %9 {offsets = [0, 4], sizes = [8, 4], strides = [1, 1]} : vector<8x32xf32> to vector<8x4xf32>
    %15 = arith.addf %13, %14 : vector<8x4xf32>
    %16 = vector.extract_strided_slice %9 {offsets = [0, 8], sizes = [8, 4], strides = [1, 1]} : vector<8x32xf32> to vector<8x4xf32>
    %17 = arith.addf %15, %16 : vector<8x4xf32>
    %18 = vector.extract_strided_slice %9 {offsets = [0, 12], sizes = [8, 4], strides = [1, 1]} : vector<8x32xf32> to vector<8x4xf32>
    %19 = arith.addf %17, %18 : vector<8x4xf32>
    %20 = vector.extract_strided_slice %9 {offsets = [0, 16], sizes = [8, 4], strides = [1, 1]} : vector<8x32xf32> to vector<8x4xf32>
    %21 = arith.addf %19, %20 : vector<8x4xf32>
    %22 = vector.extract_strided_slice %9 {offsets = [0, 20], sizes = [8, 4], strides = [1, 1]} : vector<8x32xf32> to vector<8x4xf32>
    %23 = arith.addf %21, %22 : vector<8x4xf32>
    %24 = vector.extract_strided_slice %9 {offsets = [0, 24], sizes = [8, 4], strides = [1, 1]} : vector<8x32xf32> to vector<8x4xf32>
    %25 = arith.addf %23, %24 : vector<8x4xf32>
    %26 = vector.extract_strided_slice %9 {offsets = [0, 28], sizes = [8, 4], strides = [1, 1]} : vector<8x32xf32> to vector<8x4xf32>
    %27 = arith.addf %25, %26 : vector<8x4xf32>
    %28 = arith.mulf %27, %27 : vector<8x4xf32>
    %cst_7 = arith.constant dense<0.000000e+00> : vector<8xf32>
    %29 = vector.multi_reduction <add>, %28, %cst_7 [1] : vector<8x4xf32> to vector<8xf32>
    %30 = vector.shape_cast %29 : vector<8xf32> to vector<8x1xf32>
    %31 = arith.subf %30, %12 : vector<8x1xf32>
    %cst_8 = arith.constant 5.000000e-01 : f32
    %32 = vector.broadcast %cst_8 : f32 to vector<8x1xf32>
    %33 = arith.mulf %32, %31 : vector<8x1xf32>
    %34 = arith.addf %8, %33 : vector<8x1xf32>
    %c0_9 = arith.constant 0 : index
    %c0_10 = arith.constant 0 : index
    %35 = vector.load %arg5[%c0_9, %c0_10] : memref<8x1xf32, #tpu.memory_space<vmem>>, vector<8x1xf32>
    tpu.vector_store %arg5[%c0_9, %c0_10], %34 {strides = array<i32>} : memref<8x1xf32, #tpu.memory_space<vmem>>, vector<8x1xf32>,
    return
  }
  func.func @transform_0(%arg0: i32) -> (i32, i32) {
    %c0_i32 = arith.constant 0 : i32
    %c0_i32_0 = arith.constant 0 : i32
    return %arg0, %c0_i32 : i32, i32
  }
  func.func @transform_1(%arg0: i32) -> (i32, i32) {
    %c0_i32 = arith.constant 0 : i32
    %c0_i32_0 = arith.constant 0 : i32
    return %arg0, %c0_i32 : i32, i32
  }
  func.func @transform_2(%arg0: i32) -> (i32, i32) {
    %c0_i32 = arith.constant 0 : i32
    %c0_i32_0 = arith.constant 0 : i32
    %c0_i32_1 = arith.constant 0 : i32
    return %c0_i32, %c0_i32_0 : i32, i32
  }
  func.func @transform_3(%arg0: i32) -> i32 {
    %c0_i32 = arith.constant 0 : i32
    %c0_i32_0 = arith.constant 0 : i32
    return %c0_i32 : i32
  }
  func.func @transform_4(%arg0: i32) -> (i32, i32) {
    %c0_i32 = arith.constant 0 : i32
    %c0_i32_0 = arith.constant 0 : i32
    return %arg0, %c0_i32 : i32, i32
  }
}

</mosaic_0001>

<bundles_post_ra>
// kernel: tpu_custom_call.1
= control target key start
LH: loop header
LB: loop body
LE: loop exit
PB: predicated region body
PF: predicated region fallthrough
CT: control target
= control target key end

     0   :  { %s126_s17 = smov 124   ;;  %s127_s18 = smov 116   ;;  %vm36_vm0 = vcmask 261120   ;;  %vm70_vm1 = vcmask 31744   ;;  %vm27_vm2 = vcmask 523264   ;;  %vm77_vm3 = vcmask 7168   ;;  %s173_s0 = inlined_call_operand.vmem [shape: f32[2,64], index: 0, kind: input, shape index: {}]   ;;  %s174_s1 = inlined_call_operand.vmem [shape: f32[2,32], index: 1, kind: input, shape index: {}]   ;;  %s175_s2 = inlined_call_operand.vmem [shape: f32[1,64], index: 2, kind: input, shape index: {}]   ;;  %s176_s3 = inlined_call_operand.<no memory space> [shape: f32[1], index: 3, kind: input, shape index: {}]   ;;  %s177_s4 = inlined_call_operand.vmem [shape: f32[2,1], index: 4, kind: output, shape index: {}]  }
   0x1   :  { %v34_v0 = vld [vmem:[%s174_s1] sm:$0xff]  ;;  %s128_s19 = smov 120   ;;  %s129_s20 = smov 112   ;;  %v32_v26 = vstv %s176_s3 }
   0x2   :  { %41 = vrot.lane.b32.xlu0 %v34_v0, %s126_s17  ;;  %49 = vrot.lane.b32.xlu1 %v34_v0, %s127_s18  ;;  %s130_s21 = smov 108   ;;  %s131_s22 = smov 104   ;;  %v35_v1 = vmul.f32 %v34_v0, %v34_v0  ;;  %v18_v16 = vld [vmem:[%s173_s0] sm:$0xff] }
   0x3   :  { %s132_s23 = smov 100   ;;  %v118_v17 = vld [vmem:[%s175_s2] ss:$0 sm:$0xff] }
   0x4   :  { %v37_v2 = vsel %vm36_vm0, %v35_v1, 0.0  ;;  %v26_v20 = vmul.f32 %v118_v17, %v18_v16 }
   0x6   :  { %45 = vrot.lane.b32.xlu0 %v34_v0, %s128_s19  ;;  %53 = vrot.lane.b32.xlu1 %v34_v0, %s129_s20  ;;  %v28_v22 = vsel %vm27_vm2, %v26_v20, 0.0 }
   0xa   :  { %57 = vrot.lane.b32.xlu0 %v34_v0, %s130_s21  ;;  %61 = vrot.lane.b32.xlu1 %v34_v0, %s131_s22 }
   0xe   :  { %65 = vrot.lane.b32.xlu0 %v34_v0, %s132_s23 }
  0x2e   :  { %38 = vadd.xlane.f32.xlu1 %v37_v2 }
  0x74   :  { %v42_v3 = vpop.permute.xlu0 %41  ;;  %v50_v4 = vpop.permute.xlu1 %49 }
  0x75   :  { %v44_v5 = vadd.f32 %v42_v3, %v34_v0 }
  0x78   :  { %v46_v6 = vpop.permute.xlu0 %45  ;;  %v54_v7 = vpop.permute.xlu1 %53 }
  0x79   :  { %v48_v8 = vadd.f32 %v46_v6, %v44_v5 }
  0x7b   :  { %v52_v9 = vadd.f32 %v50_v4, %v48_v8 }
  0x7c   :  { %v58_v10 = vpop.permute.xlu0 %57  ;;  %v62_v12 = vpop.permute.xlu1 %61 }
  0x7d   :  { %v56_v11 = vadd.f32 %v54_v7, %v52_v9 }
  0x7f   :  { %v60_v13 = vadd.f32 %v58_v10, %v56_v11 }
  0x80   :  { %v66_v14 = vpop.permute.xlu0 %65 }
  0x81   :  { %v64_v15 = vadd.f32 %v62_v12, %v60_v13 }
  0x83   :  { %v68_v18 = vadd.f32 %v66_v14, %v64_v15 }
  0x85   :  { %v69_v19 = vmul.f32 %v68_v18, %v68_v18 }
  0x87   :  { %v71_v21 = vsel %vm70_vm1, %v69_v19, 0.0 }
  0x88   :  { %72 = vadd.xlane.f32.xlu0 %v71_v21 }
  0x8c   :  { %29 = vadd.xlane.f32.xlu0 %v28_v22 }
  0xbb   :  { %v39_v23 = vpop.xlane.xlu1 %38 }
 0x115   :  { %v73_v24 = vpop.xlane.xlu0 %72 }
 0x116   :  { %v74_v25 = vsub.f32 %v73_v24, %v39_v23 }
 0x118   :  { %v75_v28 = vmul.f32 0.5, %v74_v25 }
 0x119   :  { %v30_v27 = vpop.xlane.xlu0 %29 }
 0x11a   :  { %v33_v29 = vadd.f32 %v32_v26, %v30_v27 }
 0x11c   :  { %v76_v30 = vadd.f32 %v75_v28, %v33_v29 }
 0x11e   :  { %78 = vst.msk [vmem:[#allocation3] sm:$0xff] %vm77_vm3, %v76_v30 }
 0x125   :  { %v96_v31 = vld [vmem:[#allocation3] sm:$0x3] }
 0x126   :  { %97 = vst [vmem:[%s177_s4] sm:$0x3] %v96_v31 }

</bundles_post_ra>
